<compile_context>
chip_gen: v6e
topology: v6e:2x2x1
jax: 0.10.0
libtpu: 0.0.40
codegen_flags: <defaults>
</compile_context>

<pallas_src>
import functools

import jax
import jax.numpy as jnp
from jax.experimental import pallas as pl
from jax.experimental.pallas import tpu as pltpu


_NONLIN = {
    "relu": lambda x: jnp.maximum(x, 0.0),
    "sigmoid": jax.nn.sigmoid,
    "softplus": jax.nn.softplus,
    "tanh": jnp.tanh,
    "leaky_relu": lambda x: jnp.where(x > 0, x, 0.01 * x),
}


def _mlp_bbb_fused_kernel(*refs, num_layers, nonlinearity, compute_dtype):
    """Fused forward for the whole Bayesian MLP on one batch tile.

    refs = (x_ref,
            [w_mu, w_sigma, w_eps, b_mu, b_sigma, b_eps]  x num_layers,
            o_ref)
    Per layer:  w = w_mu + w_sigma * w_eps        (sigma = softplus(rho), hoisted)
                b = b_mu + b_sigma * b_eps
                h = act(h @ w + b)                (no act on the last layer)
    """
    x_ref = refs[0]
    o_ref = refs[-1]
    act = _NONLIN[nonlinearity]

    h = x_ref[...]                                            # [tb, In0] f32
    for layer in range(num_layers):
        base = 1 + 6 * layer
        wmu_ref, wsig_ref, weps_ref, bmu_ref, bsig_ref, beps_ref = refs[base:base + 6]

        # Reparameterization trick (f32 elementwise, VPU only — no transcendentals).
        w = wmu_ref[...] + wsig_ref[...] * weps_ref[...]      # [In_l, Out_l]
        b = bmu_ref[...] + bsig_ref[...] * beps_ref[...]      # [1, Out_l]

        # bf16 operands into the MXU, f32 accumulate.
        y = jnp.dot(h.astype(compute_dtype), w.astype(compute_dtype),
                    preferred_element_type=jnp.float32)       # [tb, Out_l]
        y = y + b
        if layer < num_layers - 1:
            y = act(y)
        h = y

    o_ref[...] = h.astype(o_ref.dtype)


def mlp_bbb_forward(x, params, eps, *, nonlinearity="relu",
                    compute_dtype=jnp.bfloat16, batch_tile=128):
    """Full MLP_BBB.forward in a single fused Pallas kernel.

    x:       [B, In0] float32
    params:  list of dicts with w_mu/w_rho [Out, In] and b_mu/b_rho [Out]
    eps:     list of dicts with w_eps [Out, In] and b_eps [Out]
    returns: [B, Out_last] float32
    """
    B, in_dim = x.shape
    num_layers = len(params)
    out_dim = params[-1]["w_mu"].shape[0]

    # Batch tiling: tile only when it divides evenly; a whole-batch block otherwise.
    tb = batch_tile if (B % batch_tile == 0) else B
    grid = (B // tb,)

    inputs = [x]
    in_specs = [pl.BlockSpec((tb, in_dim), lambda i: (i, 0))]
    for p, e in zip(params, eps):
        out_f, in_f = p["w_mu"].shape
        # Hoist softplus out of the kernel; present weights in [In, Out] layout.
        w_mu = p["w_mu"].T
        w_sigma = jax.nn.softplus(p["w_rho"]).T
        w_eps = e["w_eps"].T
        b_mu = p["b_mu"].reshape(1, out_f)
        b_sigma = jax.nn.softplus(p["b_rho"]).reshape(1, out_f)
        b_eps = e["b_eps"].reshape(1, out_f)
        inputs += [w_mu, w_sigma, w_eps, b_mu, b_sigma, b_eps]

        # Constant block index -> weights stay VMEM-resident across batch tiles.
        wspec = pl.BlockSpec((in_f, out_f), lambda i: (0, 0))
        bspec = pl.BlockSpec((1, out_f), lambda i: (0, 0))
        in_specs += [wspec, wspec, wspec, bspec, bspec, bspec]

    kernel = functools.partial(
        _mlp_bbb_fused_kernel,
        num_layers=num_layers,
        nonlinearity=nonlinearity,
        compute_dtype=compute_dtype,
    )

    return pl.pallas_call(
        kernel,
        out_shape=jax.ShapeDtypeStruct((B, out_dim), jnp.float32),
        grid=grid,
        in_specs=in_specs,
        out_specs=pl.BlockSpec((tb, out_dim), lambda i: (i, 0)),
        compiler_params=pltpu.CompilerParams(
            dimension_semantics=("parallel",),   # shards batch tiles across TCs (v7x)
        ),
    )(*inputs)
    # TODO(synk): eps could instead be generated on-chip (pltpu.prng_seed +
    # pltpu.stateful_normal) to cut one weight-sized HBM stream per layer; kept as an
    # explicit input here for deterministic testing against the reference.


def mlp_bbb_reference(x, params, eps, *, nonlinearity="relu"):
    """Pure-JAX reference matching the PyTorch forward (f32 throughout)."""
    act = _NONLIN[nonlinearity]
    h = x
    n = len(params)
    for i, (p, e) in enumerate(zip(params, eps)):
        w = p["w_mu"] + jax.nn.softplus(p["w_rho"]) * e["w_eps"]
        b = p["b_mu"] + jax.nn.softplus(p["b_rho"]) * e["b_eps"]
        h = h @ w.T + b
        if i < n - 1:
            h = act(h)
    return h


def init_mlp_bbb_params(key, input_dim, layer_wid):
    """Deterministic init matching Linear_BBB.__init__ distributions."""
    dims = [input_dim] + list(layer_wid)
    params = []
    for i in range(len(layer_wid)):
        fan_in, fan_out = dims[i], dims[i + 1]
        key, k1, k2, k3, k4 = jax.random.split(key, 5)
        params.append(dict(
            w_mu=jax.random.uniform(k1, (fan_out, fan_in), jnp.float32, -0.05, 0.05),
            w_rho=jax.random.uniform(k2, (fan_out, fan_in), jnp.float32, -2.0, -1.0),
            b_mu=jax.random.uniform(k3, (fan_out,), jnp.float32, -0.05, 0.05),
            b_rho=jax.random.uniform(k4, (fan_out,), jnp.float32, -2.0, -1.0),
        ))
    return params, key


def sample_epsilons(key, params):
    """Standard-normal epsilons for the reparameterization trick (one fwd pass)."""
    eps = []
    for p in params:
        key, kw, kb = jax.random.split(key, 3)
        eps.append(dict(
            w_eps=jax.random.normal(kw, p["w_mu"].shape, jnp.float32),
            b_eps=jax.random.normal(kb, p["b_mu"].shape, jnp.float32),
        ))
    return eps, key


if __name__ == "__main__":
    # Small shapes consistent with the module: input_dim=16, layer_wid=[32, 32, 8]
    batch = 8
    input_dim = 16
    layer_wid = [32, 32, 8]
    nonlinearity = "relu"

    key = jax.random.PRNGKey(0)
    params, key = init_mlp_bbb_params(key, input_dim, layer_wid)
    eps, key = sample_epsilons(key, params)

    key, kx = jax.random.split(key)
    x = jax.random.normal(kx, (batch, input_dim), jnp.float32)

    fwd = jax.jit(functools.partial(mlp_bbb_forward, nonlinearity=nonlinearity))
    out = fwd(x, params, eps)
    jax.block_until_ready(out)

    ref = mlp_bbb_reference(x, params, eps, nonlinearity=nonlinearity)
    max_err = float(jnp.max(jnp.abs(out - ref)))

    assert out.shape == (batch, layer_wid[-1])
    assert out.dtype == jnp.float32
    assert max_err < 1e-1, f"max abs error vs reference too large: {max_err}"
    print("KERNEL_OK")

    # TODO(synk): log_prior / log_post / sample_elbo are training-time loss
    # bookkeeping (scalar log-prob reductions), not part of the forward hot path;
    # they are not implemented inside the kernel.
</pallas_src>

<mosaic_0001>
module attributes {stable_mosaic.version = 11 : i64} {
  func.func @_mlp_bbb_fused_kernel(%arg0: i32, %arg1: memref<8x16xf32, #tpu.memory_space<vmem>>, %arg2: memref<16x32xf32, #tpu.memory_space<vmem>>, %arg3: memref<16x32xf32, #tpu.memory_space<vmem>>, %arg4: memref<16x32xf32, #tpu.memory_space<vmem>>, %arg5: memref<1x32xf32, #tpu.memory_space<vmem>>, %arg6: memref<1x32xf32, #tpu.memory_space<vmem>>, %arg7: memref<1x32xf32, #tpu.memory_space<vmem>>, %arg8: memref<32x32xf32, #tpu.memory_space<vmem>>, %arg9: memref<32x32xf32, #tpu.memory_space<vmem>>, %arg10: memref<32x32xf32, #tpu.memory_space<vmem>>, %arg11: memref<1x32xf32, #tpu.memory_space<vmem>>, %arg12: memref<1x32xf32, #tpu.memory_space<vmem>>, %arg13: memref<1x32xf32, #tpu.memory_space<vmem>>, %arg14: memref<32x8xf32, #tpu.memory_space<vmem>>, %arg15: memref<32x8xf32, #tpu.memory_space<vmem>>, %arg16: memref<32x8xf32, #tpu.memory_space<vmem>>, %arg17: memref<1x8xf32, #tpu.memory_space<vmem>>, %arg18: memref<1x8xf32, #tpu.memory_space<vmem>>, %arg19: memref<1x8xf32, #tpu.memory_space<vmem>>, %arg20: memref<8x8xf32, #tpu.memory_space<vmem>>) attributes {dimension_semantics = [#tpu.dimension_semantics<parallel>], iteration_bounds = array<i64: 1>, scalar_prefetch = 0 : i64, scratch_operands = 0 : i64, tpu.core_type = #tpu.core_type<tc>, window_params = [{transform_indices = @transform_0, window_bounds = array<i64: 8, 16>}, {pipeline_mode = #tpu.pipeline_mode<synchronous>, transform_indices = @transform_1, window_bounds = array<i64: 16, 32>}, {pipeline_mode = #tpu.pipeline_mode<synchronous>, transform_indices = @transform_2, window_bounds = array<i64: 16, 32>}, {pipeline_mode = #tpu.pipeline_mode<synchronous>, transform_indices = @transform_3, window_bounds = array<i64: 16, 32>}, {pipeline_mode = #tpu.pipeline_mode<synchronous>, transform_indices = @transform_4, window_bounds = array<i64: 1, 32>}, {pipeline_mode = #tpu.pipeline_mode<synchronous>, transform_indices = @transform_5, window_bounds = array<i64: 1, 32>}, {pipeline_mode = #tpu.pipeline_mode<synchronous>, transform_indices = @transform_6, window_bounds = array<i64: 1, 32>}, {pipeline_mode = #tpu.pipeline_mode<synchronous>, transform_indices = @transform_7, window_bounds = array<i64: 32, 32>}, {pipeline_mode = #tpu.pipeline_mode<synchronous>, transform_indices = @transform_8, window_bounds = array<i64: 32, 32>}, {pipeline_mode = #tpu.pipeline_mode<synchronous>, transform_indices = @transform_9, window_bounds = array<i64: 32, 32>}, {pipeline_mode = #tpu.pipeline_mode<synchronous>, transform_indices = @transform_10, window_bounds = array<i64: 1, 32>}, {pipeline_mode = #tpu.pipeline_mode<synchronous>, transform_indices = @transform_11, window_bounds = array<i64: 1, 32>}, {pipeline_mode = #tpu.pipeline_mode<synchronous>, transform_indices = @transform_12, window_bounds = array<i64: 1, 32>}, {pipeline_mode = #tpu.pipeline_mode<synchronous>, transform_indices = @transform_13, window_bounds = array<i64: 32, 8>}, {pipeline_mode = #tpu.pipeline_mode<synchronous>, transform_indices = @transform_14, window_bounds = array<i64: 32, 8>}, {pipeline_mode = #tpu.pipeline_mode<synchronous>, transform_indices = @transform_15, window_bounds = array<i64: 32, 8>}, {pipeline_mode = #tpu.pipeline_mode<synchronous>, transform_indices = @transform_16, window_bounds = array<i64: 1, 8>}, {pipeline_mode = #tpu.pipeline_mode<synchronous>, transform_indices = @transform_17, window_bounds = array<i64: 1, 8>}, {pipeline_mode = #tpu.pipeline_mode<synchronous>, transform_indices = @transform_18, window_bounds = array<i64: 1, 8>}, {transform_indices = @transform_19, window_bounds = array<i64: 8, 8>}]} {
    %c0 = arith.constant 0 : index
    %c0_0 = arith.constant 0 : index
    %0 = vector.load %arg1[%c0, %c0_0] : memref<8x16xf32, #tpu.memory_space<vmem>>, vector<8x16xf32>
    %c0_1 = arith.constant 0 : index
    %c0_2 = arith.constant 0 : index
    %1 = vector.load %arg2[%c0_1, %c0_2] : memref<16x32xf32, #tpu.memory_space<vmem>>, vector<16x32xf32>
    %c0_3 = arith.constant 0 : index
    %c0_4 = arith.constant 0 : index
    %2 = vector.load %arg3[%c0_3, %c0_4] : memref<16x32xf32, #tpu.memory_space<vmem>>, vector<16x32xf32>
    %c0_5 = arith.constant 0 : index
    %c0_6 = arith.constant 0 : index
    %3 = vector.load %arg4[%c0_5, %c0_6] : memref<16x32xf32, #tpu.memory_space<vmem>>, vector<16x32xf32>
    %4 = arith.mulf %2, %3 : vector<16x32xf32>
    %5 = arith.addf %1, %4 : vector<16x32xf32>
    %c0_7 = arith.constant 0 : index
    %c0_8 = arith.constant 0 : index
    %6 = vector.load %arg5[%c0_7, %c0_8] : memref<1x32xf32, #tpu.memory_space<vmem>>, vector<1x32xf32>
    %c0_9 = arith.constant 0 : index
    %c0_10 = arith.constant 0 : index
    %7 = vector.load %arg6[%c0_9, %c0_10] : memref<1x32xf32, #tpu.memory_space<vmem>>, vector<1x32xf32>
    %c0_11 = arith.constant 0 : index
    %c0_12 = arith.constant 0 : index
    %8 = vector.load %arg7[%c0_11, %c0_12] : memref<1x32xf32, #tpu.memory_space<vmem>>, vector<1x32xf32>
    %9 = arith.mulf %7, %8 : vector<1x32xf32>
    %10 = arith.addf %6, %9 : vector<1x32xf32>
    %11 = arith.truncf %0 : vector<8x16xf32> to vector<8x16xbf16>
    %12 = arith.truncf %5 : vector<16x32xf32> to vector<16x32xbf16>
    %cst = arith.constant dense<0.000000e+00> : vector<8x32xf32>
    %13 = tpu.matmul %11, %12, %cst {dimension_numbers = #tpu.dot_dimension_numbers<[1], [0], [0], [1], [0, 0, 1, 1], [], []>} : vector<8x16xbf16>, vector<16x32xbf16>, vector<8x32xf32> -> vector<8x32xf32>
    %14 = vector.broadcast %10 : vector<1x32xf32> to vector<8x32xf32>
    %15 = arith.addf %13, %14 : vector<8x32xf32>
    %cst_13 = arith.constant 0.000000e+00 : f32
    %16 = vector.broadcast %cst_13 : f32 to vector<8x32xf32>
    %17 = arith.maximumf %15, %16 : vector<8x32xf32>
    %c0_14 = arith.constant 0 : index
    %c0_15 = arith.constant 0 : index
    %18 = vector.load %arg8[%c0_14, %c0_15] : memref<32x32xf32, #tpu.memory_space<vmem>>, vector<32x32xf32>
    %c0_16 = arith.constant 0 : index
    %c0_17 = arith.constant 0 : index
    %19 = vector.load %arg9[%c0_16, %c0_17] : memref<32x32xf32, #tpu.memory_space<vmem>>, vector<32x32xf32>
    %c0_18 = arith.constant 0 : index
    %c0_19 = arith.constant 0 : index
    %20 = vector.load %arg10[%c0_18, %c0_19] : memref<32x32xf32, #tpu.memory_space<vmem>>, vector<32x32xf32>
    %21 = arith.mulf %19, %20 : vector<32x32xf32>
    %22 = arith.addf %18, %21 : vector<32x32xf32>
    %c0_20 = arith.constant 0 : index
    %c0_21 = arith.constant 0 : index
    %23 = vector.load %arg11[%c0_20, %c0_21] : memref<1x32xf32, #tpu.memory_space<vmem>>, vector<1x32xf32>
    %c0_22 = arith.constant 0 : index
    %c0_23 = arith.constant 0 : index
    %24 = vector.load %arg12[%c0_22, %c0_23] : memref<1x32xf32, #tpu.memory_space<vmem>>, vector<1x32xf32>
    %c0_24 = arith.constant 0 : index
    %c0_25 = arith.constant 0 : index
    %25 = vector.load %arg13[%c0_24, %c0_25] : memref<1x32xf32, #tpu.memory_space<vmem>>, vector<1x32xf32>
    %26 = arith.mulf %24, %25 : vector<1x32xf32>
    %27 = arith.addf %23, %26 : vector<1x32xf32>
    %28 = arith.truncf %17 : vector<8x32xf32> to vector<8x32xbf16>
    %29 = arith.truncf %22 : vector<32x32xf32> to vector<32x32xbf16>
    %cst_26 = arith.constant dense<0.000000e+00> : vector<8x32xf32>
    %30 = tpu.matmul %28, %29, %cst_26 {dimension_numbers = #tpu.dot_dimension_numbers<[1], [0], [0], [1], [0, 0, 1, 1], [], []>} : vector<8x32xbf16>, vector<32x32xbf16>, vector<8x32xf32> -> vector<8x32xf32>
    %31 = vector.broadcast %27 : vector<1x32xf32> to vector<8x32xf32>
    %32 = arith.addf %30, %31 : vector<8x32xf32>
    %cst_27 = arith.constant 0.000000e+00 : f32
    %33 = vector.broadcast %cst_27 : f32 to vector<8x32xf32>
    %34 = arith.maximumf %32, %33 : vector<8x32xf32>
    %c0_28 = arith.constant 0 : index
    %c0_29 = arith.constant 0 : index
    %35 = vector.load %arg14[%c0_28, %c0_29] : memref<32x8xf32, #tpu.memory_space<vmem>>, vector<32x8xf32>
    %c0_30 = arith.constant 0 : index
    %c0_31 = arith.constant 0 : index
    %36 = vector.load %arg15[%c0_30, %c0_31] : memref<32x8xf32, #tpu.memory_space<vmem>>, vector<32x8xf32>
    %c0_32 = arith.constant 0 : index
    %c0_33 = arith.constant 0 : index
    %37 = vector.load %arg16[%c0_32, %c0_33] : memref<32x8xf32, #tpu.memory_space<vmem>>, vector<32x8xf32>
    %38 = arith.mulf %36, %37 : vector<32x8xf32>
    %39 = arith.addf %35, %38 : vector<32x8xf32>
    %c0_34 = arith.constant 0 : index
    %c0_35 = arith.constant 0 : index
    %40 = vector.load %arg17[%c0_34, %c0_35] : memref<1x8xf32, #tpu.memory_space<vmem>>, vector<1x8xf32>
    %c0_36 = arith.constant 0 : index
    %c0_37 = arith.constant 0 : index
    %41 = vector.load %arg18[%c0_36, %c0_37] : memref<1x8xf32, #tpu.memory_space<vmem>>, vector<1x8xf32>
    %c0_38 = arith.constant 0 : index
    %c0_39 = arith.constant 0 : index
    %42 = vector.load %arg19[%c0_38, %c0_39] : memref<1x8xf32, #tpu.memory_space<vmem>>, vector<1x8xf32>
    %43 = arith.mulf %41, %42 : vector<1x8xf32>
    %44 = arith.addf %40, %43 : vector<1x8xf32>
    %45 = arith.truncf %34 : vector<8x32xf32> to vector<8x32xbf16>
    %46 = arith.truncf %39 : vector<32x8xf32> to vector<32x8xbf16>
    %cst_40 = arith.constant dense<0.000000e+00> : vector<8x8xf32>
    %47 = tpu.matmul %45, %46, %cst_40 {dimension_numbers = #tpu.dot_dimension_numbers<[1], [0], [0], [1], [0, 0, 1, 1], [], []>} : vector<8x32xbf16>, vector<32x8xbf16>, vector<8x8xf32> -> vector<8x8xf32>
    %48 = vector.broadcast %44 : vector<1x8xf32> to vector<8x8xf32>
    %49 = arith.addf %47, %48 : vector<8x8xf32>
    %c0_41 = arith.constant 0 : index
    %c0_42 = arith.constant 0 : index
    %50 = vector.load %arg20[%c0_41, %c0_42] : memref<8x8xf32, #tpu.memory_space<vmem>>, vector<8x8xf32>
    tpu.vector_store %arg20[%c0_41, %c0_42], %49 {strides = array<i32>} : memref<8x8xf32, #tpu.memory_space<vmem>>, vector<8x8xf32>,
    return
  }
  func.func @transform_0(%arg0: i32) -> (i32, i32) {
    %c0_i32 = arith.constant 0 : i32
    %c0_i32_0 = arith.constant 0 : i32
    return %arg0, %c0_i32 : i32, i32
  }
  func.func @transform_1(%arg0: i32) -> (i32, i32) {
    %c0_i32 = arith.constant 0 : i32
    %c0_i32_0 = arith.constant 0 : i32
    %c0_i32_1 = arith.constant 0 : i32
    return %c0_i32, %c0_i32_0 : i32, i32
  }
  func.func @transform_2(%arg0: i32) -> (i32, i32) {
    %c0_i32 = arith.constant 0 : i32
    %c0_i32_0 = arith.constant 0 : i32
    %c0_i32_1 = arith.constant 0 : i32
    return %c0_i32, %c0_i32_0 : i32, i32
  }
  func.func @transform_3(%arg0: i32) -> (i32, i32) {
    %c0_i32 = arith.constant 0 : i32
    %c0_i32_0 = arith.constant 0 : i32
    %c0_i32_1 = arith.constant 0 : i32
    return %c0_i32, %c0_i32_0 : i32, i32
  }
  func.func @transform_4(%arg0: i32) -> (i32, i32) {
    %c0_i32 = arith.constant 0 : i32
    %c0_i32_0 = arith.constant 0 : i32
    %c0_i32_1 = arith.constant 0 : i32
    return %c0_i32, %c0_i32_0 : i32, i32
  }
  func.func @transform_5(%arg0: i32) -> (i32, i32) {
    %c0_i32 = arith.constant 0 : i32
    %c0_i32_0 = arith.constant 0 : i32
    %c0_i32_1 = arith.constant 0 : i32
    return %c0_i32, %c0_i32_0 : i32, i32
  }
  func.func @transform_6(%arg0: i32) -> (i32, i32) {
    %c0_i32 = arith.constant 0 : i32
    %c0_i32_0 = arith.constant 0 : i32
    %c0_i32_1 = arith.constant 0 : i32
    return %c0_i32, %c0_i32_0 : i32, i32
  }
  func.func @transform_7(%arg0: i32) -> (i32, i32) {
    %c0_i32 = arith.constant 0 : i32
    %c0_i32_0 = arith.constant 0 : i32
    %c0_i32_1 = arith.constant 0 : i32
    return %c0_i32, %c0_i32_0 : i32, i32
  }
  func.func @transform_8(%arg0: i32) -> (i32, i32) {
    %c0_i32 = arith.constant 0 : i32
    %c0_i32_0 = arith.constant 0 : i32
    %c0_i32_1 = arith.constant 0 : i32
    return %c0_i32, %c0_i32_0 : i32, i32
  }
  func.func @transform_9(%arg0: i32) -> (i32, i32) {
    %c0_i32 = arith.constant 0 : i32
    %c0_i32_0 = arith.constant 0 : i32
    %c0_i32_1 = arith.constant 0 : i32
    return %c0_i32, %c0_i32_0 : i32, i32
  }
  func.func @transform_10(%arg0: i32) -> (i32, i32) {
    %c0_i32 = arith.constant 0 : i32
    %c0_i32_0 = arith.constant 0 : i32
    %c0_i32_1 = arith.constant 0 : i32
    return %c0_i32, %c0_i32_0 : i32, i32
  }
  func.func @transform_11(%arg0: i32) -> (i32, i32) {
    %c0_i32 = arith.constant 0 : i32
    %c0_i32_0 = arith.constant 0 : i32
    %c0_i32_1 = arith.constant 0 : i32
    return %c0_i32, %c0_i32_0 : i32, i32
  }
  func.func @transform_12(%arg0: i32) -> (i32, i32) {
    %c0_i32 = arith.constant 0 : i32
    %c0_i32_0 = arith.constant 0 : i32
    %c0_i32_1 = arith.constant 0 : i32
    return %c0_i32, %c0_i32_0 : i32, i32
  }
  func.func @transform_13(%arg0: i32) -> (i32, i32) {
    %c0_i32 = arith.constant 0 : i32
    %c0_i32_0 = arith.constant 0 : i32
    %c0_i32_1 = arith.constant 0 : i32
    return %c0_i32, %c0_i32_0 : i32, i32
  }
  func.func @transform_14(%arg0: i32) -> (i32, i32) {
    %c0_i32 = arith.constant 0 : i32
    %c0_i32_0 = arith.constant 0 : i32
    %c0_i32_1 = arith.constant 0 : i32
    return %c0_i32, %c0_i32_0 : i32, i32
  }
  func.func @transform_15(%arg0: i32) -> (i32, i32) {
    %c0_i32 = arith.constant 0 : i32
    %c0_i32_0 = arith.constant 0 : i32
    %c0_i32_1 = arith.constant 0 : i32
    return %c0_i32, %c0_i32_0 : i32, i32
  }
  func.func @transform_16(%arg0: i32) -> (i32, i32) {
    %c0_i32 = arith.constant 0 : i32
    %c0_i32_0 = arith.constant 0 : i32
    %c0_i32_1 = arith.constant 0 : i32
    return %c0_i32, %c0_i32_0 : i32, i32
  }
  func.func @transform_17(%arg0: i32) -> (i32, i32) {
    %c0_i32 = arith.constant 0 : i32
    %c0_i32_0 = arith.constant 0 : i32
    %c0_i32_1 = arith.constant 0 : i32
    return %c0_i32, %c0_i32_0 : i32, i32
  }
  func.func @transform_18(%arg0: i32) -> (i32, i32) {
    %c0_i32 = arith.constant 0 : i32
    %c0_i32_0 = arith.constant 0 : i32
    %c0_i32_1 = arith.constant 0 : i32
    return %c0_i32, %c0_i32_0 : i32, i32
  }
  func.func @transform_19(%arg0: i32) -> (i32, i32) {
    %c0_i32 = arith.constant 0 : i32
    %c0_i32_0 = arith.constant 0 : i32
    return %arg0, %c0_i32 : i32, i32
  }
}

</mosaic_0001>

<bundles_post_ra>
// kernel: mlp_bbb_forward.1
= control target key start
LH: loop header
LB: loop body
LE: loop exit
PB: predicated region body
PF: predicated region fallthrough
CT: control target
= control target key end

     0   :  { %s594_s0 = inlined_call_operand.vmem [shape: f32[8,16], index: 0, kind: input, shape index: {}]   ;;  %s595_s1 = inlined_call_operand.vmem [shape: f32[16,32], index: 1, kind: input, shape index: {}]   ;;  %s596_s2 = inlined_call_operand.vmem [shape: f32[16,32], index: 2, kind: input, shape index: {}]   ;;  %s597_s3 = inlined_call_operand.vmem [shape: f32[16,32], index: 3, kind: input, shape index: {}]   ;;  %s598_s4 = inlined_call_operand.vmem [shape: f32[1,32], index: 4, kind: input, shape index: {}]   ;;  %s599_s5 = inlined_call_operand.vmem [shape: f32[1,32], index: 5, kind: input, shape index: {}]   ;;  %s600_s6 = inlined_call_operand.vmem [shape: f32[1,32], index: 6, kind: input, shape index: {}]   ;;  %s601_s7 = inlined_call_operand.vmem [shape: f32[32,32], index: 7, kind: input, shape index: {}]   ;;  %s602_s8 = inlined_call_operand.vmem [shape: f32[32,32], index: 8, kind: input, shape index: {}]   ;;  %s603_s9 = inlined_call_operand.vmem [shape: f32[32,32], index: 9, kind: input, shape index: {}]   ;;  %s604_s10 = inlined_call_operand.vmem [shape: f32[1,32], index: 10, kind: input, shape index: {}]   ;;  %s605_s11 = inlined_call_operand.vmem [shape: f32[1,32], index: 11, kind: input, shape index: {}]   ;;  %s606_s12 = inlined_call_operand.vmem [shape: f32[1,32], index: 12, kind: input, shape index: {}]   ;;  %s607_s13 = inlined_call_operand.vmem [shape: f32[32,8], index: 13, kind: input, shape index: {}]   ;;  %s608_s14 = inlined_call_operand.vmem [shape: f32[32,8], index: 14, kind: input, shape index: {}]   ;;  %s609_s15 = inlined_call_operand.vmem [shape: f32[32,8], index: 15, kind: input, shape index: {}]   ;;  %s610_s16 = inlined_call_operand.vmem [shape: f32[1,8], index: 16, kind: input, shape index: {}]   ;;  %s611_s17 = inlined_call_operand.vmem [shape: f32[1,8], index: 17, kind: input, shape index: {}]   ;;  %s612_s18 = inlined_call_operand.vmem [shape: f32[1,8], index: 18, kind: input, shape index: {}]   ;;  %s613_s19 = inlined_call_operand.hbm [shape: f32[8,8], index: 19, kind: output, shape index: {}]  }
   0x1   :  { %617 = sst [smem:[#allocation5_spill]] %s594_s0 }
   0x2   :  { %618 = sst [smem:[#allocation6_spill]] %s595_s1 }
   0x3   :  { %619 = sst [smem:[#allocation7_spill]] %s596_s2 }
   0x4   :  { %620 = sst [smem:[#allocation8_spill]] %s597_s3 }
   0x5   :  { %s621_s20 = sld [smem:[#allocation6_spill]]  ;;  %v363_v3 = vmov 0.0   ;;  %vm364_vm0 = vmmov 0  }
   0x6   :  { %s622_s23 = sld [smem:[#allocation7_spill]]  ;;  %316 = vmatprep.subr.bf16.mxu0 %v363_v3  ;;  %318 = vmatprep.mubr.msk.bf16.mxu0 %vm364_vm0, %v363_v3 }
   0x7   :  { %s623_s27 = sld [smem:[#allocation8_spill]]  ;;  %322 = vmatprep.subr.bf16.mxu1 %v363_v3  ;;  %326 = vmatprep.mubr.msk.bf16.mxu1 %vm364_vm0, %v363_v3 }
   0xb   :  { %v65_v0 = vld [vmem:[%s621_s20] sm:$0xff]  ;;  %v66_v1 = vld [vmem:[%s621_s20 + $0x8] sm:$0xff] }
   0xc   :  { %v67_v2 = vld [vmem:[%s622_s23] sm:$0xff]  ;;  %v68_v4 = vld [vmem:[%s622_s23 + $0x8] sm:$0xff] }
   0xd   :  { %v69_v5 = vld [vmem:[%s623_s27] sm:$0xff]  ;;  %v70_v6 = vld [vmem:[%s623_s27 + $0x8] sm:$0xff] }
   0xe   :  { %v71_v7 = vmul.f32 %v69_v5, %v67_v2  ;;  %v72_v8 = vmul.f32 %v70_v6, %v68_v4 }
   0xf   :  { %24 = vsyncpa [#allocation3], 0  ;;  %s624_s20 = sld [smem:[#allocation5_spill]]  ;;  %vm88_vm1 = vcmask 130048   ;;  %v139_v14 = vld [vmem:[%s602_s8 + $0x10] sm:$0xff]  ;;  %v140_v15 = vld [vmem:[%s602_s8 + $0x18] sm:$0xff]  ;;  %v83_v47 = vlaneseq }
  0x10   :  { %v73_v9 = vadd.f32 %v71_v7, %v65_v0  ;;  %v74_v10 = vadd.f32 %v72_v8, %v66_v1  ;;  %v143_v16 = vld [vmem:[%s603_s9 + $0x10] sm:$0xff]  ;;  %v144_v17 = vld [vmem:[%s603_s9 + $0x18] sm:$0xff]  ;;  %v137_v24 = vld [vmem:[%s602_s8] sm:$0xff]  ;;  %vm167_vm2 = vcmask 261120   ;;  %s365_s25 = smov [#allocation2]   ;;  %vm289_vm3 = vcmask 64512  }
  0x11   :  { %v147_v18 = vmul.f32 %v143_v16, %v139_v14  ;;  %v135_v19 = vld [vmem:[%s601_s7 + $0x10] sm:$0xff]  ;;  %v136_v20 = vld [vmem:[%s601_s7 + $0x18] sm:$0xff]  ;;  %v148_v21 = vmul.f32 %v144_v17, %v140_v15  ;;  %v138_v25 = vld [vmem:[%s602_s8 + $0x8] sm:$0xff]  ;;  %v84_v51 = vshrl.u32 %v83_v47, 7  ;;  %s297_s3 = sshll.u32 %s365_s25, 4  ;;  %s298_s3 = int_to_ptr.vmem [resolvable:$true] %s297_s3 }
  0x12   :  { %v81_v12 = vpack.c.bf16 %v74_v10, %v73_v9  ;;  %v141_v26 = vld [vmem:[%s603_s9] sm:$0xff]  ;;  %v142_v27 = vld [vmem:[%s603_s9 + $0x8] sm:$0xff]  ;;  %v214_v36 = vld [vmem:[%s607_s13 + $0x10] sm:$0xff]  ;;  %p346_p1 = scmp.lt.s32.totalorder %s298_s3, %s298_s3 }
  0x13   :  { %v151_v22 = vadd.f32 %v147_v18, %v135_v19  ;;  %v152_v23 = vadd.f32 %v148_v21, %v136_v20  ;;  %v145_v28 = vmul.f32 %v141_v26, %v137_v24  ;;  %v133_v30 = vld [vmem:[%s601_s7] sm:$0xff]  ;;  %v134_v31 = vld [vmem:[%s601_s7 + $0x8] sm:$0xff]  ;;  %v146_v32 = vmul.f32 %v142_v27, %v138_v25  ;;  %v215_v37 = vld [vmem:[%s607_s13 + $0x18] sm:$0xff] }
  0x14   :  { %317 = vmatpush3.bf16.msra.mxu0 %v81_v12  ;;  %v218_v38 = vld [vmem:[%s608_s14 + $0x10] sm:$0xff]  ;;  %v219_v39 = vld [vmem:[%s608_s14 + $0x18] sm:$0xff]  ;;  %v76_v48 = vld [vmem:[%s599_s5] sm:$0x1]  ;;  %v85_v54 = vsub.s32 0, %v84_v51 }
  0x15   :  { %v64_v11 = vld [vmem:[%s624_s20] sm:$0xff]  ;;  %330 = vmatprep.subr.bf16.mxu0 %v363_v3  ;;  %v160_v29 = vpack.c.bf16 %v152_v23, %v151_v22  ;;  %v149_v33 = vadd.f32 %v145_v28, %v133_v30  ;;  %v150_v34 = vadd.f32 %v146_v32, %v134_v31  ;;  %v222_v40 = vld [vmem:[%s609_s15 + $0x10] sm:$0xff]  ;;  %v223_v41 = vld [vmem:[%s609_s15 + $0x18] sm:$0xff] }
  0x16   :  { %v80_v13 = vpack.c.bf16 %v64_v11, %v64_v11  ;;  %v226_v42 = vmul.f32 %v222_v40, %v218_v38  ;;  %v227_v43 = vmul.f32 %v223_v41, %v219_v39  ;;  %v77_v49 = vld [vmem:[%s600_s6] sm:$0x1]  ;;  %v217_v0 = vld [vmem:[%s608_s14 + $0x8] sm:$0xff] }
  0x17   :  { %323 = vmatpush3.bf16.msra.mxu1 %v160_v29  ;;  %v159_v35 = vpack.c.bf16 %v150_v34, %v149_v33  ;;  %v78_v50 = vmul.f32 %v77_v49, %v76_v48  ;;  %v75_v52 = vld [vmem:[%s598_s4] sm:$0x1]  ;;  %v221_v2 = vld [vmem:[%s609_s15 + $0x8] sm:$0xff] }
  0x18   :  { %319 = vmatmul.mubr.msk.bf16.vlgmr.msra.gmra.mxu0 %vm88_vm1, %v80_v13  ;;  %324 = vmatprep.subr.bf16.mxu1 %v363_v3  ;;  %v230_v44 = vadd.f32 %v226_v42, %v214_v36  ;;  %v231_v45 = vadd.f32 %v227_v43, %v215_v37  ;;  %v216_v63 = vld [vmem:[%s608_s14] sm:$0xff]  ;;  %v213_v5 = vld [vmem:[%s607_s13 + $0x8] sm:$0xff]  ;;  %v225_v6 = vmul.f32 %v221_v2, %v217_v0 }
  0x19   :  { %334 = vmatprep.mubr.msk.bf16.mxu0 %vm364_vm0, %v363_v3  ;;  %v79_v53 = vadd.f32 %v78_v50, %v75_v52  ;;  %v220_v1 = vld [vmem:[%s609_s15] sm:$0xff] }
  0x1a   :  { %v239_v46 = vpack.c.bf16 %v231_v45, %v230_v44  ;;  %v212_v4 = vld [vmem:[%s607_s13] sm:$0xff]  ;;  %v229_v8 = vadd.f32 %v225_v6, %v213_v5 }
  0x1b   :  { %325 = vmatpush3.bf16.msra.mxu1 %v159_v35  ;;  %v86_v55 = vrot.slane %v79_v53, %v85_v54  ;;  %v154_v10 = vld [vmem:[%s605_s11] sm:$0x1] }
  0x1c   :  { %331 = vmatpush3.bf16.msra.mxu0 %v239_v46  ;;  %v155_v11 = vld [vmem:[%s606_s12] sm:$0x1] }
  0x1d   :  { %332 = vmatprep.subr.bf16.mxu0 %v363_v3  ;;  %v224_v3 = vmul.f32 %v220_v1, %v216_v63  ;;  %v156_v12 = vmul.f32 %v155_v11, %v154_v10  ;;  %v153_v13 = vld [vmem:[%s604_s10] sm:$0x1] }
  0x1e   :  { %v233_v23 = vld [vmem:[%s611_s17] sm:$0x1]  ;;  %s341_s17 = scalar_lea.vmem %s298_s3, 128 }
  0x1f   :  { %v228_v7 = vadd.f32 %v224_v3, %v212_v4  ;;  %v157_v14 = vadd.f32 %v156_v12, %v153_v13  ;;  %v234_v24 = vld [vmem:[%s612_s18] sm:$0x1]  ;;  %p342_p0 = scmp.ne.s32.totalorder %s298_s3, %s341_s17  ;;  %p347_p2 = scmp.lt.s32.totalorder %s341_s17, %s341_s17 }
  0x20   :  { %v235_v25 = vmul.f32 %v234_v24, %v233_v23  ;;  %v232_v26 = vld [vmem:[%s610_s16] sm:$0x1] }
  0x21   :  { %v238_v9 = vpack.c.bf16 %v229_v8, %v228_v7  ;;  %v165_v15 = vrot.slane %v157_v14, %v85_v54  ;;  %p348_p3 = por %p347_p2, %p346_p1 }
  0x22   :  { %v236_v27 = vadd.f32 %v235_v25, %v232_v26 }
  0x23   :  { %333 = vmatpush3.bf16.msra.mxu0 %v238_v9  ;;  %p349_p4 = pnand %p348_p3, %p342_p0 }
  0x24   :  { %v244_v28 = vrot.slane %v236_v27, %v85_v54 }
  0xd8   :  { %v126_v56 = vpop.f32.mrf.mxu0 }
  0xd9   :  { %v127_v57 = vadd.f32 %v126_v56, %v86_v55 }
  0xda   :  { %v320_v58 = vpop.f32.mrf.mxu0 }
  0xdb   :  { %v132_v59 = vmax.f32 %v127_v57, 0.0 }
  0xdc   :  { %v129_v60 = vpop.f32.mrf.mxu0 }
  0xdd   :  { %v158_v61 = vpack.c.bf16 %v132_v59, %v132_v59 }
  0xde   :  { %v321_v62 = vpop.f32.mrf.mxu0 }
  0xdf   :  { %327 = vmatmul.mubr.msk.bf16.vlgmr.msra.gmra.mxu1 %vm167_vm2, %v158_v61 }
 0x19f   :  { %v205_v16 = vpop.f32.mrf.mxu1 }
 0x1a0   :  { %v206_v17 = vadd.f32 %v205_v16, %v165_v15 }
 0x1a1   :  { %v328_v18 = vpop.f32.mrf.mxu1 }
 0x1a2   :  { %v211_v19 = vmax.f32 %v206_v17, 0.0 }
 0x1a3   :  { %v208_v20 = vpop.f32.mrf.mxu1 }
 0x1a4   :  { %v237_v21 = vpack.c.bf16 %v211_v19, %v211_v19 }
 0x1a5   :  { %v329_v22 = vpop.f32.mrf.mxu1 }
 0x1a6   :  { %335 = vmatmul.mubr.msk.bf16.vlgmr.msra.gmra.mxu0 %vm167_vm2, %v237_v21 }
 0x266   :  { %v283_v29 = vpop.f32.mrf.mxu0 }
 0x267   :  { %v284_v30 = vadd.f32 %v283_v29, %v244_v28 }
 0x268   :  { %v336_v31 = vpop.f32.mrf.mxu0 }
 0x269   :  { %290 = vst.msk [vmem:[#allocation2] sm:$0xff] %vm289_vm3, %v284_v30 }
 0x26a   :  { %v286_v32 = vpop.f32.mrf.mxu0 }
 0x26b   :  { %352 = shalt.err (!%p349_p4)
}
 0x26c   :  { %300 = dma.vmem_to_hbm [thread:$0]  %s298_s3, 128, %s613_s19, [#allocation3]   ;;  %v337_v33 = vpop.f32.mrf.mxu0 }
 0x26d   :  { %361 = dma.done.wait [#allocation3], 128  }
 0x26e   :  { %362 = vsyncadd [#allocation3], 4294967168 }
 0x26f   :  { %304 = vsyncpa [#allocation3], 1 }

</bundles_post_ra>
